<compile_context>
chip_gen: v7x
topology: tpu7x:2x2x1
jax: 0.10.0
libtpu: 0.0.40
codegen_flags: <defaults>
</compile_context>

<pallas_src>
import functools

import jax
import jax.numpy as jnp
import numpy as np
from jax import lax
from jax.experimental import pallas as pl
from jax.experimental.pallas import tpu as pltpu

_TILE_M = 2048                         # token tile for the MLP projections


def _round_up(x, m):
    return (x + m - 1) // m * m


def _vmem_limit_bytes():
    """Generation-aware VMEM budget (v7x: 64 MiB/TC, v5e/v6e: 128 MiB)."""
    cap = 64 * 1024 * 1024
    try:
        cap = int(pltpu.get_tpu_info().vmem_capacity_bytes)
    except Exception:
        pass
    return int(max(32 * 1024 * 1024, min(cap * 3 // 4, 100 * 1024 * 1024)))


_VMEM_LIMIT = _vmem_limit_bytes()


def _largest_divisor(n, cap):
    """Largest divisor of n that is <= cap (always >= 1)."""
    cap = int(max(1, min(n, cap)))
    for t in range(cap, 0, -1):
        if n % t == 0:
            return t
    return 1


# ----------------------------------------------------------------------------
# MLP projection kernel
# ----------------------------------------------------------------------------
def _linear_kernel(x_ref, w_ref, b_ref, o_ref):
    acc = jnp.dot(x_ref[...], w_ref[...], preferred_element_type=jnp.float32)
    o_ref[...] = (acc + b_ref[...]).astype(o_ref.dtype)


def linear_bias(x_bf16, w_bf16, b):
    """(M, K) @ (K, E) + (E,) -> (M, E) bf16, tiled + pipelined over tokens M."""
    m, k = x_bf16.shape
    e = w_bf16.shape[1]
    tm = min(_TILE_M, m)
    return pl.pallas_call(
        _linear_kernel,
        out_shape=jax.ShapeDtypeStruct((m, e), jnp.bfloat16),
        grid=(pl.cdiv(m, tm),),
        in_specs=[
            pl.BlockSpec((tm, k), lambda i: (i, 0)),
            pl.BlockSpec((k, e), lambda i: (0, 0)),
            pl.BlockSpec((1, e), lambda i: (0, 0)),
        ],
        out_specs=pl.BlockSpec((tm, e), lambda i: (i, 0)),
        compiler_params=pltpu.CompilerParams(
            dimension_semantics=("parallel",),
            vmem_limit_bytes=_VMEM_LIMIT),
    )(x_bf16, w_bf16, b.reshape(1, e))


# ----------------------------------------------------------------------------
# Fusion (coordinate attention + mix + 1x1 conv)
# ----------------------------------------------------------------------------
def _fusion_fused_kernel(xu_ref, xd_ref, wc_ref, wh_ref, ww_ref, wf_ref, bf_ref,
                         o_ref):
    """Single-pass fusion: CA scores + mix + 1x1 conv on a whole per-batch slab."""
    _, h, w, e = xu_ref.shape
    xu = xu_ref[0].astype(jnp.float32)
    xd = xd_ref[0].astype(jnp.float32)
    xs = xu + xd

    x_h = jnp.mean(xs, axis=1)                               # (H, E)  pool over W
    x_w = jnp.mean(xs, axis=0)                               # (W, E)  pool over H
    mid_h = jnp.maximum(jnp.dot(x_h.astype(jnp.bfloat16), wc_ref[...],
                                preferred_element_type=jnp.float32), 0.0)
    mid_w = jnp.maximum(jnp.dot(x_w.astype(jnp.bfloat16), wc_ref[...],
                                preferred_element_type=jnp.float32), 0.0)
    s_h = jax.nn.sigmoid(jnp.dot(mid_h.astype(jnp.bfloat16), wh_ref[...],
                                 preferred_element_type=jnp.float32))
    s_w = jax.nn.sigmoid(jnp.dot(mid_w.astype(jnp.bfloat16), ww_ref[...],
                                 preferred_element_type=jnp.float32))

    score = xs * s_h.reshape(h, 1, e) * s_w.reshape(1, w, e)
    fused = xu * score + xd * (1.0 - score)
    out = jnp.dot(fused.reshape(h * w, e).astype(jnp.bfloat16), wf_ref[...],
                  preferred_element_type=jnp.float32) + bf_ref[...]
    o_ref[0] = out.reshape(h, w, e).astype(o_ref.dtype)


def _fusion_score_kernel(xu_ref, xd_ref, wc_ref, wh_ref, ww_ref,
                         sh_ref, sw_ref, sumw_ref, *, h_total):
    """Fallback pass 1: pooled scores s_h (per row) and s_w (per column)."""
    i = pl.program_id(1)
    xs = xu_ref[0].astype(jnp.float32) + xd_ref[0].astype(jnp.float32)

    xh = jnp.mean(xs, axis=1)                                # (tile_h, E)
    mid_h = jnp.maximum(jnp.dot(xh.astype(jnp.bfloat16), wc_ref[...],
                                preferred_element_type=jnp.float32), 0.0)
    sh_ref[0] = jax.nn.sigmoid(
        jnp.dot(mid_h.astype(jnp.bfloat16), wh_ref[...],
                preferred_element_type=jnp.float32)).astype(sh_ref.dtype)

    @pl.when(i == 0)
    def _():
        sumw_ref[...] = jnp.zeros_like(sumw_ref)

    sumw_ref[...] += jnp.sum(xs, axis=0)                     # (W, E)

    @pl.when(i == pl.num_programs(1) - 1)
    def _():
        xw = sumw_ref[...] * (1.0 / h_total)
        mid_w = jnp.maximum(jnp.dot(xw.astype(jnp.bfloat16), wc_ref[...],
                                    preferred_element_type=jnp.float32), 0.0)
        sw_ref[0] = jax.nn.sigmoid(
            jnp.dot(mid_w.astype(jnp.bfloat16), ww_ref[...],
                    preferred_element_type=jnp.float32)).astype(sw_ref.dtype)


def _fusion_apply_kernel(xu_ref, xd_ref, sh_ref, sw_ref, wf_ref, bf_ref, o_ref):
    """Fallback pass 2: score application + mix + 1x1 conv, row-tiled."""
    _, th, w, e = xu_ref.shape
    xu = xu_ref[0].astype(jnp.float32)
    xd = xd_ref[0].astype(jnp.float32)
    xs = xu + xd
    score = xs * sh_ref[0].reshape(th, 1, e) * sw_ref[0].reshape(1, w, e)
    fused = xu * score + xd * (1.0 - score)
    out = jnp.dot(fused.reshape(th * w, e).astype(jnp.bfloat16), wf_ref[...],
                  preferred_element_type=jnp.float32) + bf_ref[...]
    o_ref[0] = out.reshape(th, w, e).astype(o_ref.dtype)


def fusion_block(x_u, x_d, p):
    """Fusion module.  Single fused kernel (one HBM read of x_u/x_d) when the
    per-batch slab fits VMEM; two-pass row-tiled fallback otherwise."""
    n, h, w, e = x_u.shape
    bf16 = jnp.bfloat16

    r = p["ca_wc"].shape[1]
    rp = _round_up(r, 128)                                   # pad tiny CA hidden dim
    wc = jnp.pad(p["ca_wc"], ((0, 0), (0, rp - r))).astype(bf16)
    wh = jnp.pad(p["ca_wh"], ((0, rp - r), (0, 0))).astype(bf16)
    ww = jnp.pad(p["ca_ww"], ((0, rp - r), (0, 0))).astype(bf16)
    wf = p["conv_w"].astype(bf16)
    bfb = p["conv_b"].reshape(1, e)

    x_u = x_u.astype(bf16)
    x_d = x_d.astype(bf16)

    slab = h * w * e * 2                                     # bf16 per-batch slab
    weight_bytes = (e * rp + 2 * rp * e + e * e) * 2
    if 12 * slab + weight_bytes + (4 << 20) <= _VMEM_LIMIT:
        return pl.pallas_call(
            _fusion_fused_kernel,
            out_shape=jax.ShapeDtypeStruct((n, h, w, e), bf16),
            grid=(n,),
            in_specs=[
                pl.BlockSpec((1, h, w, e), lambda b: (b, 0, 0, 0)),
                pl.BlockSpec((1, h, w, e), lambda b: (b, 0, 0, 0)),
                pl.BlockSpec((e, rp), lambda b: (0, 0)),
                pl.BlockSpec((rp, e), lambda b: (0, 0)),
                pl.BlockSpec((rp, e), lambda b: (0, 0)),
                pl.BlockSpec((e, e), lambda b: (0, 0)),
                pl.BlockSpec((1, e), lambda b: (0, 0)),
            ],
            out_specs=pl.BlockSpec((1, h, w, e), lambda b: (b, 0, 0, 0)),
            compiler_params=pltpu.CompilerParams(
                dimension_semantics=("parallel",),
                vmem_limit_bytes=_VMEM_LIMIT),
        )(x_u, x_d, wc, wh, ww, wf, bfb)

    # -------- fallback: two-pass row-tiled (slab does not fit VMEM) --------
    per_row = w * e * 32
    tile_h = _largest_divisor(h, max(1, (_VMEM_LIMIT - (8 << 20)) // per_row))
    grid = (n, h // tile_h)

    s_h, s_w = pl.pallas_call(
        functools.partial(_fusion_score_kernel, h_total=h),
        out_shape=(jax.ShapeDtypeStruct((n, h, e), jnp.float32),
                   jax.ShapeDtypeStruct((n, w, e), jnp.float32)),
        grid=grid,
        in_specs=[
            pl.BlockSpec((1, tile_h, w, e), lambda b, i: (b, i, 0, 0)),
            pl.BlockSpec((1, tile_h, w, e), lambda b, i: (b, i, 0, 0)),
            pl.BlockSpec((e, rp), lambda b, i: (0, 0)),
            pl.BlockSpec((rp, e), lambda b, i: (0, 0)),
            pl.BlockSpec((rp, e), lambda b, i: (0, 0)),
        ],
        out_specs=(pl.BlockSpec((1, tile_h, e), lambda b, i: (b, i, 0)),
                   pl.BlockSpec((1, w, e), lambda b, i: (b, 0, 0))),
        scratch_shapes=[pltpu.VMEM((w, e), jnp.float32)],
        compiler_params=pltpu.CompilerParams(
            dimension_semantics=("parallel", "arbitrary"),
            vmem_limit_bytes=_VMEM_LIMIT),
    )(x_u, x_d, wc, wh, ww)

    return pl.pallas_call(
        _fusion_apply_kernel,
        out_shape=jax.ShapeDtypeStruct((n, h, w, e), bf16),
        grid=grid,
        in_specs=[
            pl.BlockSpec((1, tile_h, w, e), lambda b, i: (b, i, 0, 0)),
            pl.BlockSpec((1, tile_h, w, e), lambda b, i: (b, i, 0, 0)),
            pl.BlockSpec((1, tile_h, e), lambda b, i: (b, i, 0)),
            pl.BlockSpec((1, w, e), lambda b, i: (b, 0, 0)),
            pl.BlockSpec((e, e), lambda b, i: (0, 0)),
            pl.BlockSpec((1, e), lambda b, i: (0, 0)),
        ],
        out_specs=pl.BlockSpec((1, tile_h, w, e), lambda b, i: (b, i, 0, 0)),
        compiler_params=pltpu.CompilerParams(
            dimension_semantics=("parallel", "parallel"),
            vmem_limit_bytes=_VMEM_LIMIT),
    )(x_u, x_d, s_h, s_w, wf, bfb)


# ----------------------------------------------------------------------------
# 7x7 conv + BN + Dropout2d(identity) + 1x1 prediction conv
# ----------------------------------------------------------------------------
def _conv7_bn_pred_kernel(xp_hbm, w_ref, bns_ref, bnb_ref, wp_ref, bp_ref,
                          o_ref, xwin_ref, lhs_ref, sem):
    _, tile_h, w, ncls = o_ref.shape
    _, _, wpad, ep = xwin_ref.shape
    e_out = w_ref.shape[2]
    b = pl.program_id(0)
    i = pl.program_id(1)
    n_i = pl.num_programs(1)

    def fetch(tile_idx, slot):
        row0 = tile_idx * tile_h
        if tile_h % 8 == 0:
            row0 = pl.multiple_of(row0, 8)
        pltpu.make_async_copy(xp_hbm.at[b, pl.ds(row0, tile_h + 6)],
                              xwin_ref.at[slot], sem.at[slot]).start()

    # Prime the pipeline at the first row tile of every batch.
    @pl.when(i == 0)
    def _():
        fetch(0, 0)

    slot = lax.rem(i, 2)
    pltpu.make_async_copy(xp_hbm.at[b, pl.ds(i * tile_h, tile_h + 6)],
                          xwin_ref.at[slot], sem.at[slot]).wait()

    # Prefetch the next halo window while this tile computes (double-buffered).
    @pl.when(i + 1 < n_i)
    def _():
        fetch(i + 1, 1 - slot)

    xb = xwin_ref[slot]                                      # (tile_h+6, Wp, Ep) bf16
    # Stack the 7 dy-shifted slabs along the contraction dim (Ep % 128 == 0, so the
    # lane offsets dy*Ep are tile-aligned).
    for dy in range(7):
        lhs_ref[:, dy * ep:(dy + 1) * ep] = (
            xb[dy:dy + tile_h].reshape(tile_h * wpad, ep))
    lhs = lhs_ref[...]                                       # (tile_h*Wp, 7*Ep)

    acc = jnp.zeros((tile_h, w, e_out), jnp.float32)
    for dx in range(7):                                      # 7 deep (K = 7*Ep) matmuls
        s = jnp.dot(lhs, w_ref[dx], preferred_element_type=jnp.float32)
        acc = acc + s.reshape(tile_h, wpad, e_out)[:, dx:dx + w, :]

    y = acc * bns_ref[0] + bnb_ref[0]                        # folded eval-mode BatchNorm
    # Dropout2d(0.1) is identity at inference; fuse the 1x1 prediction conv and emit
    # only the true num_classes lanes (no 128-wide padded f32 write-back).
    logits = jnp.dot(y.reshape(tile_h * w, e_out).astype(jnp.bfloat16), wp_ref[...],
                     preferred_element_type=jnp.float32)
    logits = logits[:, :ncls] + bp_ref[...]
    o_ref[0] = logits.reshape(tile_h, w, ncls).astype(o_ref.dtype)


def _conv_row_tile(h, wp, ep, w, ncls):
    fixed = (7 * 7 * ep * ep * 2                             # resident stacked weights
             + 6 * wp * ep * 2 * 2                           # halo rows (both slots)
             + ep * _round_up(ncls, 128) * 2 + (4 << 20))
    per_row = wp * ep * (2 * 2 + 7 * 2 + 8) + 2 * w * max(ncls, 8) * 4
    cap = (_VMEM_LIMIT - fixed) // per_row
    return _largest_divisor(h, max(1, cap))


def conv7x7_bn_pred(x, w49, bn_scale, bn_shift, wpred, bpred):
    n, h, w, e = x.shape
    ncls = wpred.shape[1]
    bf16 = jnp.bfloat16
    ep = _round_up(e, 128)                                   # lane-aligned channel pad
    wp = _round_up(w + 6, 8)                                 # sublane-friendly width
    xp = jnp.pad(x.astype(bf16),
                 ((0, 0), (3, 3), (3, wp - w - 3), (0, ep - e)))

    # (49, E, E) indexed dy*7+dx  ->  (7_dx, 7*Ep, E): per-dx dy-stacks along K.
    w_st = jnp.transpose(w49.reshape(7, 7, e, e), (1, 0, 2, 3))
    w_st = jnp.pad(w_st, ((0, 0), (0, 0), (0, ep - e), (0, 0)))
    w_st = w_st.reshape(7, 7 * ep, e).astype(bf16)

    cpad = _round_up(ncls, 128)
    wpred_p = jnp.pad(wpred, ((0, 0), (0, cpad - ncls))).astype(bf16)

    tile_h = _conv_row_tile(h, wp, ep, w, ncls)
    return pl.pallas_call(
        _conv7_bn_pred_kernel,
        out_shape=jax.ShapeDtypeStruct((n, h, w, ncls), jnp.float32),
        grid=(n, h // tile_h),
        in_specs=[
            pl.BlockSpec(memory_space=pl.ANY),               # padded image stays in HBM
            pl.BlockSpec((7, 7 * ep, e), lambda b, i: (0, 0, 0)),
            pl.BlockSpec((1, e), lambda b, i: (0, 0)),
            pl.BlockSpec((1, e), lambda b, i: (0, 0)),
            pl.BlockSpec((e, cpad), lambda b, i: (0, 0)),
            pl.BlockSpec((1, ncls), lambda b, i: (0, 0)),
        ],
        out_specs=pl.BlockSpec((1, tile_h, w, ncls), lambda b, i: (b, i, 0, 0)),
        scratch_shapes=[pltpu.VMEM((2, tile_h + 6, wp, ep), bf16),
                        pltpu.VMEM((tile_h * wp, 7 * ep), bf16),
                        pltpu.SemaphoreType.DMA((2,))],
        compiler_params=pltpu.CompilerParams(
            dimension_semantics=("parallel", "arbitrary"),
            vmem_limit_bytes=_VMEM_LIMIT),
    )(xp, w_st, bn_scale.reshape(1, e), bn_shift.reshape(1, e),
      wpred_p, bpred.reshape(1, ncls))


# ----------------------------------------------------------------------------
# JAX glue
# ----------------------------------------------------------------------------
def bilinear_resize_nhwc(x, out_h, out_w):
    """Bilinear resize matching torch F.interpolate(mode='bilinear', align_corners=False).
    Computes in f32, stores in the input dtype (bf16 activations)."""
    _, h, w, _ = x.shape
    if (h, w) == (out_h, out_w):
        return x
    orig = x.dtype
    xf = x.astype(jnp.float32)

    def idx_weights(in_size, out_size):
        o = jnp.arange(out_size, dtype=jnp.float32)
        src = (o + 0.5) * (in_size / out_size) - 0.5
        src = jnp.clip(src, 0.0, float(in_size - 1))
        i0 = jnp.floor(src).astype(jnp.int32)
        i1 = jnp.minimum(i0 + 1, in_size - 1)
        lam = src - i0.astype(jnp.float32)
        return i0, i1, lam

    r0, r1, rl = idx_weights(h, out_h)
    c0, c1, cl = idx_weights(w, out_w)
    xf = (xf[:, r0, :, :] * (1.0 - rl)[None, :, None, None]
          + xf[:, r1, :, :] * rl[None, :, None, None])
    xf = (xf[:, :, c0, :] * (1.0 - cl)[None, None, :, None]
          + xf[:, :, c1, :] * cl[None, None, :, None])
    return xf.astype(orig)


def segformer_headz_forward(inputs, params):
    """inputs: [c1, c2, c3, c4] in NCHW (PyTorch convention). Returns NCHW logits."""
    c1, c2, c3, c4 = [jnp.transpose(c, (0, 2, 3, 1)) for c in inputs]  # NCHW -> NHWC
    e = params["embed_dim"]
    bf16 = jnp.bfloat16

    def mlp(x, w, b):
        n_, hh, ww, cc = x.shape
        y = linear_bias(x.reshape(n_ * hh * ww, cc).astype(bf16), w.astype(bf16), b)
        return y.reshape(n_, hh, ww, e)

    _c4 = mlp(c4, params["w4"], params["b4"])
    _c4 = bilinear_resize_nhwc(_c4, c3.shape[1], c3.shape[2])

    _c3 = fusion_block(mlp(c3, params["w3"], params["b3"]), _c4, params["fusion3"])
    _c3 = bilinear_resize_nhwc(_c3, c2.shape[1], c2.shape[2])

    _c2 = fusion_block(mlp(c2, params["w2"], params["b2"]), _c3, params["fusion2"])
    _c2 = bilinear_resize_nhwc(_c2, c1.shape[1], c1.shape[2])

    _c1 = fusion_block(mlp(c1, params["w1"], params["b1"]), _c2, params["fusion1"])

    logits = conv7x7_bn_pred(_c1, params["convfusion_w"], params["bn_scale"],
                             params["bn_shift"], params["wpred"], params["bpred"])
    return jnp.transpose(logits, (0, 3, 1, 2))               # NHWC -> NCHW


# ----------------------------------------------------------------------------
# Pure-JAX reference (mirrors the bf16-activation / f32-accumulate kernel math)
# ----------------------------------------------------------------------------
def _bmm(eq, a, b):
    return jnp.einsum(eq, a.astype(jnp.bfloat16), b.astype(jnp.bfloat16),
                      preferred_element_type=jnp.float32)


def _ref_fusion(x_u, x_d, p):
    x_u = x_u.astype(jnp.float32)
    x_d = x_d.astype(jnp.float32)
    xs = x_u + x_d
    x_h = jnp.mean(xs, axis=2)
    x_w = jnp.mean(xs, axis=1)
    mid_h = jax.nn.relu(_bmm("nhc,cr->nhr", x_h, p["ca_wc"]))
    mid_w = jax.nn.relu(_bmm("nwc,cr->nwr", x_w, p["ca_wc"]))
    s_h = jax.nn.sigmoid(_bmm("nhr,re->nhe", mid_h, p["ca_wh"]))[:, :, None, :]
    s_w = jax.nn.sigmoid(_bmm("nwr,re->nwe", mid_w, p["ca_ww"]))[:, None, :, :]
    score = xs * s_h * s_w
    fused = x_u * score + x_d * (1.0 - score)
    return (_bmm("nhwc,cd->nhwd", fused, p["conv_w"]) + p["conv_b"]).astype(jnp.bfloat16)


def reference_forward(inputs, params):
    c1, c2, c3, c4 = [jnp.transpose(c, (0, 2, 3, 1)) for c in inputs]
    e = params["embed_dim"]
    bf16 = jnp.bfloat16

    def mlp(x, w, b):
        return (_bmm("nhwc,ce->nhwe", x, w) + b).astype(bf16)

    _c4 = bilinear_resize_nhwc(mlp(c4, params["w4"], params["b4"]),
                               c3.shape[1], c3.shape[2])
    _c3 = _ref_fusion(mlp(c3, params["w3"], params["b3"]), _c4, params["fusion3"])
    _c3 = bilinear_resize_nhwc(_c3, c2.shape[1], c2.shape[2])
    _c2 = _ref_fusion(mlp(c2, params["w2"], params["b2"]), _c3, params["fusion2"])
    _c2 = bilinear_resize_nhwc(_c2, c1.shape[1], c1.shape[2])
    _c1 = _ref_fusion(mlp(c1, params["w1"], params["b1"]), _c2, params["fusion1"])

    w_hwio = params["convfusion_w"].reshape(7, 7, e, e)
    _c = lax.conv_general_dilated(
        _c1.astype(bf16), w_hwio.astype(bf16), (1, 1), "SAME",
        dimension_numbers=("NHWC", "HWIO", "NHWC"),
        preferred_element_type=jnp.float32)
    _c = _c * params["bn_scale"] + params["bn_shift"]
    logits = _bmm("nhwc,ck->nhwk", _c, params["wpred"]) + params["bpred"]
    return jnp.transpose(logits, (0, 3, 1, 2))


# ----------------------------------------------------------------------------
# Deterministic synthetic parameters
# ----------------------------------------------------------------------------
def init_params(key, in_channels, embed_dim, num_classes, reduction=16):
    keys = iter(jax.random.split(key, 40))

    def w_init(shape, fan_in):
        return jax.random.normal(next(keys), shape, jnp.float32) / np.sqrt(fan_in)

    p = {"embed_dim": embed_dim, "num_classes": num_classes}
    for idx, cin in zip([1, 2, 3, 4], in_channels):
        p[f"w{idx}"] = w_init((cin, embed_dim), cin)
        p[f"b{idx}"] = 0.01 * jax.random.normal(next(keys), (embed_dim,), jnp.float32)

    r = reduction
    for name in ["fusion1", "fusion2", "fusion3"]:
        p[name] = {
            "ca_wc": w_init((embed_dim, embed_dim // r), embed_dim),
            "ca_wh": w_init((embed_dim // r, embed_dim), embed_dim // r),
            "ca_ww": w_init((embed_dim // r, embed_dim), embed_dim // r),
            "conv_w": w_init((embed_dim, embed_dim), embed_dim),
            "conv_b": 0.01 * jax.random.normal(next(keys), (embed_dim,), jnp.float32),
        }

    p["convfusion_w"] = w_init((49, embed_dim, embed_dim), 49 * embed_dim)

    gamma = 1.0 + 0.1 * jax.random.normal(next(keys), (embed_dim,), jnp.float32)
    beta = 0.1 * jax.random.normal(next(keys), (embed_dim,), jnp.float32)
    rmean = 0.1 * jax.random.normal(next(keys), (embed_dim,), jnp.float32)
    rvar = 0.5 + jax.random.uniform(next(keys), (embed_dim,), jnp.float32)
    scale = gamma / jnp.sqrt(rvar + 1e-5)
    p["bn_scale"] = scale
    p["bn_shift"] = beta - rmean * scale

    p["wpred"] = w_init((embed_dim, num_classes), embed_dim)
    p["bpred"] = 0.01 * jax.random.normal(next(keys), (num_classes,), jnp.float32)
    return p


# ----------------------------------------------------------------------------
if __name__ == "__main__":
    key = jax.random.PRNGKey(0)
    k_in, k_p = jax.random.split(key)

    n = 2
    in_channels = [8, 16, 32, 64]           # c1..c4 channels
    embed_dim = 64
    num_classes = 4
    base = 16                                # c1 spatial; c2=8, c3=4, c4=2

    shapes = [(n, c, base // (2 ** i), base // (2 ** i))
              for i, c in enumerate(in_channels)]
    ks = jax.random.split(k_in, 4)
    inputs = [jax.random.normal(kk, s, jnp.float32) for kk, s in zip(ks, shapes)]

    params = init_params(k_p, in_channels, embed_dim, num_classes)

    out = jax.block_until_ready(segformer_headz_forward(inputs, params))
    assert out.shape == (n, num_classes, base, base), out.shape

    ref = jax.block_until_ready(reference_forward(inputs, params))
    np.testing.assert_allclose(np.asarray(out), np.asarray(ref), rtol=2e-2, atol=2e-2)

    print("KERNEL_OK")
</pallas_src>

<mosaic_0001>
module attributes {stable_mosaic.version = 11 : i64} {
  func.func @_linear_kernel(%arg0: i32, %arg1: memref<8x64xbf16, #tpu.memory_space<vmem>>, %arg2: memref<64x64xbf16, #tpu.memory_space<vmem>>, %arg3: memref<1x64xf32, #tpu.memory_space<vmem>>, %arg4: memref<8x64xbf16, #tpu.memory_space<vmem>>) attributes {dimension_semantics = [#tpu.dimension_semantics<parallel>], iteration_bounds = array<i64: 1>, scalar_prefetch = 0 : i64, scratch_operands = 0 : i64, tpu.core_type = #tpu.core_type<tc>, window_params = [{transform_indices = @transform_0, window_bounds = array<i64: 8, 64>}, {pipeline_mode = #tpu.pipeline_mode<synchronous>, transform_indices = @transform_1, window_bounds = array<i64: 64, 64>}, {pipeline_mode = #tpu.pipeline_mode<synchronous>, transform_indices = @transform_2, window_bounds = array<i64: 1, 64>}, {transform_indices = @transform_3, window_bounds = array<i64: 8, 64>}]} {
    %c0 = arith.constant 0 : index
    %c0_0 = arith.constant 0 : index
    %0 = vector.load %arg1[%c0, %c0_0] : memref<8x64xbf16, #tpu.memory_space<vmem>>, vector<8x64xbf16>
    %c0_1 = arith.constant 0 : index
    %c0_2 = arith.constant 0 : index
    %1 = vector.load %arg2[%c0_1, %c0_2] : memref<64x64xbf16, #tpu.memory_space<vmem>>, vector<64x64xbf16>
    %cst = arith.constant dense<0.000000e+00> : vector<8x64xf32>
    %2 = tpu.matmul %0, %1, %cst {dimension_numbers = #tpu.dot_dimension_numbers<[1], [0], [0], [1], [0, 0, 1, 1], [], []>} : vector<8x64xbf16>, vector<64x64xbf16>, vector<8x64xf32> -> vector<8x64xf32>
    %c0_3 = arith.constant 0 : index
    %c0_4 = arith.constant 0 : index
    %3 = vector.load %arg3[%c0_3, %c0_4] : memref<1x64xf32, #tpu.memory_space<vmem>>, vector<1x64xf32>
    %4 = vector.broadcast %3 : vector<1x64xf32> to vector<8x64xf32>
    %5 = arith.addf %2, %4 : vector<8x64xf32>
    %6 = arith.truncf %5 : vector<8x64xf32> to vector<8x64xbf16>
    %c0_5 = arith.constant 0 : index
    %c0_6 = arith.constant 0 : index
    %7 = vector.load %arg4[%c0_5, %c0_6] : memref<8x64xbf16, #tpu.memory_space<vmem>>, vector<8x64xbf16>
    tpu.vector_store %arg4[%c0_5, %c0_6], %6 {strides = array<i32>} : memref<8x64xbf16, #tpu.memory_space<vmem>>, vector<8x64xbf16>,
    return
  }
  func.func @transform_0(%arg0: i32) -> (i32, i32) {
    %c0_i32 = arith.constant 0 : i32
    %c0_i32_0 = arith.constant 0 : i32
    return %arg0, %c0_i32 : i32, i32
  }
  func.func @transform_1(%arg0: i32) -> (i32, i32) {
    %c0_i32 = arith.constant 0 : i32
    %c0_i32_0 = arith.constant 0 : i32
    %c0_i32_1 = arith.constant 0 : i32
    return %c0_i32, %c0_i32_0 : i32, i32
  }
  func.func @transform_2(%arg0: i32) -> (i32, i32) {
    %c0_i32 = arith.constant 0 : i32
    %c0_i32_0 = arith.constant 0 : i32
    %c0_i32_1 = arith.constant 0 : i32
    return %c0_i32, %c0_i32_0 : i32, i32
  }
  func.func @transform_3(%arg0: i32) -> (i32, i32) {
    %c0_i32 = arith.constant 0 : i32
    %c0_i32_0 = arith.constant 0 : i32
    return %arg0, %c0_i32 : i32, i32
  }
}

</mosaic_0001>

<bundles_post_ra>
// kernel: tpu_custom_call.1
= control target key start
LH: loop header
LB: loop body
LE: loop exit
PB: predicated region body
PF: predicated region fallthrough
CT: control target
= control target key end

     0   :  { %8 = vsyncpa [#allocation3], 0  ;;  %s324_s0 = inlined_call_operand.hbm [shape: bf16[8,64], index: 0, kind: input, shape index: {}]   ;;  %s325_s1 = inlined_call_operand.hbm [shape: bf16[64,64], index: 1, kind: input, shape index: {}]   ;;  %s326_s2 = inlined_call_operand.vmem [shape: f32[1,64], index: 2, kind: input, shape index: {}]   ;;  %s327_s3 = inlined_call_operand.hbm [shape: bf16[8,64], index: 3, kind: output, shape index: {}]  }
   0x1   :  { %9 = vsyncpa [#allocation6], 0 }
   0x2   :  { %10 = vsyncpa [#allocation4], 0  ;;  %s251_s12 = smov [#allocation2]   ;;  %s252_s14 = smov [#allocation5]  }
   0x3   :  { %s17_s13 = sshll.u32 %s251_s12, 4  ;;  %s26_s15 = sshll.u32 %s252_s14, 4  ;;  %s18_s13 = int_to_ptr.vmem [resolvable:$true] %s17_s13  ;;  %s278_s15 = int_to_ptr.vmem [resolvable:$true] %s26_s15 }
   0x4   :  { %s179_s18 = scalar_lea.hbm %s324_s0, 64 }
   0x5   :  { %p180_p0 = scmp.ne.s32.totalorder %s324_s0, %s179_s18  ;;  %p183_p1 = scmp.lt.u32.totalorder %s179_s18, %s324_s0 }
   0x7   :  { %p185_p2 = pnand %p183_p1, %p180_p0 }
   0x9   :  { %188 = shalt.err (!%p185_p2)
}
   0xa   :  { %s189_s23 = scalar_lea.vmem %s18_s13, 64  ;;  %p194_p4 = scmp.lt.s32.totalorder %s18_s13, %s18_s13 }
   0xb   :  { %p190_p3 = scmp.ne.s32.totalorder %s18_s13, %s189_s23  ;;  %p195_p5 = scmp.lt.s32.totalorder %s189_s23, %s189_s23 }
   0xd   :  { %p196_p6 = por %p195_p5, %p194_p4 }
   0xf   :  { %p197_p7 = pnand %p196_p6, %p190_p3 }
  0x11   :  { %200 = shalt.err (!%p197_p7)
}
  0x12   :  { %20 = dma.hbm_to_vmem [thread:$0]  %s324_s0, 64, %s18_s13, [#allocation3]  }
  0x13   :  { %s201_s28 = scalar_lea.hbm %s325_s1, 512 }
  0x14   :  { %p202_p8 = scmp.ne.s32.totalorder %s325_s1, %s201_s28  ;;  %p205_p9 = scmp.lt.u32.totalorder %s201_s28, %s325_s1 }
  0x16   :  { %p207_p10 = pnand %p205_p9, %p202_p8 }
  0x18   :  { %210 = shalt.err (!%p207_p10)
}
  0x19   :  { %s211_s6 = scalar_lea.vmem %s278_s15, 512  ;;  %p216_p12 = scmp.lt.s32.totalorder %s278_s15, %s278_s15 }
  0x1a   :  { %p212_p11 = scmp.ne.s32.totalorder %s278_s15, %s211_s6  ;;  %p217_p13 = scmp.lt.s32.totalorder %s211_s6, %s211_s6 }
  0x1c   :  { %p218_p0 = por %p217_p13, %p216_p12 }
  0x1e   :  { %p219_p1 = pnand %p218_p0, %p212_p11 }
  0x20   :  { %222 = shalt.err (!%p219_p1)
}
  0x21   :  { %s253_s0 = smov 64   ;;  %s254_s7 = smov 4  }
  0x22   :  { %32 = dma.hbm_to_vmem [thread:$0]  %s325_s1, 512, %s278_s15, [#allocation6], %s253_s0, %s253_s0, %s254_s7  }
  0x23   :  { %245 = dma.done.wait [#allocation3], 64  }
  0x24   :  { %246 = vsyncadd [#allocation3], 4294967232 }
  0x25   :  { %247 = dma.done.wait [#allocation6], 512  }
  0x26   :  { %248 = vsyncadd [#allocation6], 4294966784  ;;  %v255_v0 = vmov 0.0   ;;  %vm256_vm0 = vmmov 0   ;;  %v175_v1 = vld [vmem:[#allocation5] sm:$0xff]   ;;  %v176_v2 = vld [vmem:[#allocation5 + $0x8] sm:$0xff]  }
  0x27   :  { %156 = vmatprep.subr.bf16.mxu0 %v255_v0  ;;  %164 = vmatprep.mubr.msk.bf16.mxu0 %vm256_vm0, %v255_v0  ;;  %v177_v3 = vld [vmem:[#allocation5 + $0x10] sm:$0xff]   ;;  %v178_v4 = vld [vmem:[#allocation5 + $0x18] sm:$0xff]   ;;  %vm82_vm1 = vcmask 523264   ;;  %s257_s11 = smov [#allocation7]   ;;  %vm127_vm2 = vcmask 519168  }
  0x28   :  { %157 = vmatpush3.bf16.msra.mxu0 %v175_v1  ;;  %v42_v5 = vld [vmem:[#allocation2] sm:$0xf]  ;;  %s135_s12 = sshll.u32 %s257_s11, 4  ;;  %s136_s12 = int_to_ptr.vmem [resolvable:$true] %s135_s12 }
  0x29   :  { %158 = vmatprep.subr.bf16.mxu0 %v255_v0  ;;  %v145_v6 = vld [vmem:[%s326_s2] ss:$0 sm:$0xff]  ;;  %s223_s13 = scalar_lea.vmem %s136_s12, 64  ;;  %p228_p3 = scmp.lt.s32.totalorder %s136_s12, %s136_s12 }
  0x2a   :  { %p224_p2 = scmp.ne.s32.totalorder %s136_s12, %s223_s13  ;;  %p229_p4 = scmp.lt.s32.totalorder %s223_s13, %s223_s13 }
  0x2c   :  { %159 = vmatpush3.bf16.msra.mxu0 %v176_v2  ;;  %p230_p5 = por %p229_p4, %p228_p3 }
  0x2d   :  { %160 = vmatprep.subr.bf16.mxu0 %v255_v0 }
  0x2e   :  { %p231_p6 = pnand %p230_p5, %p224_p2 }
  0x30   :  { %161 = vmatpush3.bf16.msra.mxu0 %v177_v3 }
  0x31   :  { %162 = vmatprep.subr.bf16.mxu0 %v255_v0 }
  0x34   :  { %163 = vmatpush3.bf16.msra.mxu0 %v178_v4 }
  0x37   :  { %165 = vmatmul.mubr.msk.bf16.vlgmr.msra.gmra.mrb[0].mxu0 %vm82_vm1, %v42_v5 }
 0x10a   :  { %v120_v7 = vpop.f32.mrb[0].mxu0 }
 0x10b   :  { %v121_v8 = vadd.f32 %v145_v6, %v120_v7  ;;  %v166_v9 = vpop.f32.mrb[1].mxu0 }
 0x10c   :  { %v123_v10 = vpop.f32.mrb[2].mxu0 }
 0x10d   :  { %v126_v11 = vpack.c.bf16 %v121_v8, %v121_v8  ;;  %v167_v12 = vpop.f32.mrb[3].mxu0 }
 0x10f   :  { %128 = vst.msk [vmem:[#allocation7] sm:$0xf] %vm127_vm2, %v126_v11 }
 0x110   :  { %234 = shalt.err (!%p231_p6)
}
 0x111   :  { %s235_s15 = scalar_lea.hbm %s327_s3, 64 }
 0x112   :  { %p236_p7 = scmp.ne.s32.totalorder %s327_s3, %s235_s15  ;;  %p239_p8 = scmp.lt.u32.totalorder %s235_s15, %s327_s3 }
 0x114   :  { %p241_p9 = pnand %p239_p8, %p236_p7 }
 0x116   :  { %244 = shalt.err (!%p241_p9)
}
 0x117   :  { %138 = dma.vmem_to_hbm [thread:$0]  %s136_s12, 64, %s327_s3, [#allocation4]  }
 0x118   :  { %249 = dma.done.wait [#allocation4], 64  }
 0x119   :  { %250 = vsyncadd [#allocation4], 4294967232 }
 0x11a   :  { %142 = vsyncpa [#allocation3], 1 }
 0x11b   :  { %143 = vsyncpa [#allocation6], 1 }
 0x11c   :  { %144 = vsyncpa [#allocation4], 1 }

</bundles_post_ra>
